<compile_context>
chip_gen: v6e
topology: v6e:2x2x1
jax: 0.10.0
libtpu: 0.0.40
codegen_flags: <defaults>
</compile_context>

<pallas_src>
import functools

import jax
import jax.numpy as jnp
from jax import lax
from jax.experimental import pallas as pl
from jax.experimental.pallas import tpu as pltpu


_VMEM_LIMIT_BYTES = 32 * 1024 * 1024      # explicit, safe on v5e/v6e/v7x
_CONTRACT_NK = (((1,), (1,)), ((), ()))   # x:(bm,bk) . w:(bn,bk) over K -> (bm,bn)


def _round_up(x, n):
    return ((x + n - 1) // n) * n


# --------------------------------------------------------------------------
# Kernels
# --------------------------------------------------------------------------
def _sample_weight_kernel(mu_ref, rho_ref, eps_ref, w_ref, *, out_dim, in_dim):
    """Sample one (bsn, bsk) tile of the reparameterized weight in (N, K) layout.

    mu/rho/eps are the UNPADDED (out_dim, in_dim) arrays; boundary tiles read
    undefined padding which is forced to exactly 0 by the iota mask, so padded
    K columns / N rows of the sampled weight contribute nothing to the matmul.
    """
    bn, bk = w_ref.shape
    rows = pl.program_id(0) * bn + lax.broadcasted_iota(jnp.int32, (bn, bk), 0)
    cols = pl.program_id(1) * bk + lax.broadcasted_iota(jnp.int32, (bn, bk), 1)
    valid = (rows < out_dim) & (cols < in_dim)
    # softplus == torch.log1p(exp(rho)) for the init range, but overflow-safe.
    sigma = jax.nn.softplus(rho_ref[...].astype(jnp.float32))
    w = mu_ref[...].astype(jnp.float32) + sigma * eps_ref[...].astype(jnp.float32)
    w_ref[...] = jnp.where(valid, w, 0.0).astype(w_ref.dtype)


def _matmul_f32_kernel(x_ref, w_ref, o_ref):
    """x:(bm,bk) . w:(bn,bk) over K.  f32 output: accumulate directly into the
    k-invariant (VMEM-resident) output block -- no scratch, no finalize copy.
    NOTE: rows of x past m (ragged last M tile) produce garbage rows here; they
    are correct only because the HBM writeback of the boundary tile is masked.
    """
    part = lax.dot_general(x_ref[...], w_ref[...], _CONTRACT_NK,
                           preferred_element_type=jnp.float32)

    @pl.when(pl.program_id(2) == 0)
    def _init():
        o_ref[...] = part

    @pl.when(pl.program_id(2) != 0)
    def _accum():
        o_ref[...] += part


def _matmul_acc_kernel(x_ref, w_ref, o_ref, acc_ref):
    """Same matmul, but with an f32 VMEM accumulator for low-precision outputs."""
    @pl.when(pl.program_id(2) == 0)
    def _init():
        acc_ref[...] = jnp.zeros_like(acc_ref)

    acc_ref[...] += lax.dot_general(x_ref[...], w_ref[...], _CONTRACT_NK,
                                    preferred_element_type=jnp.float32)

    @pl.when(pl.program_id(2) == pl.num_programs(2) - 1)
    def _finalize():
        o_ref[...] = acc_ref[...].astype(o_ref.dtype)


def _fused_kernel(x_ref, mu_ref, rho_ref, eps_ref, o_ref, acc_ref, *, out_dim, in_dim):
    """Fused sampling + matmul: sample the (bn, bk) RHS tile inside the k-loop.

    Used for small M-tile counts, where re-sampling per M tile is cheaper than
    a full HBM write + read of the materialized weight.  The softplus/exp lands
    on the EUP slot, which is free filler while the MXU is the binding slot.
    """
    k = pl.program_id(2)

    @pl.when(k == 0)
    def _init():
        acc_ref[...] = jnp.zeros_like(acc_ref)

    bn, bk = mu_ref.shape
    rows = pl.program_id(1) * bn + lax.broadcasted_iota(jnp.int32, (bn, bk), 0)
    cols = k * bk + lax.broadcasted_iota(jnp.int32, (bn, bk), 1)
    valid = (rows < out_dim) & (cols < in_dim)
    sigma = jax.nn.softplus(rho_ref[...].astype(jnp.float32))
    w = jnp.where(
        valid,
        mu_ref[...].astype(jnp.float32) + sigma * eps_ref[...].astype(jnp.float32),
        0.0,
    ).astype(x_ref.dtype)

    acc_ref[...] += lax.dot_general(x_ref[...], w, _CONTRACT_NK,
                                    preferred_element_type=jnp.float32)

    @pl.when(k == pl.num_programs(2) - 1)
    def _finalize():
        # Ragged last M tile: garbage rows in acc are masked on HBM writeback.
        o_ref[...] = acc_ref[...].astype(o_ref.dtype)


# --------------------------------------------------------------------------
# Wrapper
# --------------------------------------------------------------------------
@functools.partial(jax.jit,
                   static_argnames=("block_m", "block_n", "block_k", "fuse_sampling"))
def bayesian_linear_forward(x, weight_mu, weight_rho, eps,
                            block_m=512, block_n=512, block_k=1024,
                            fuse_sampling=None):
    """x: (..., input_dim); weight_mu/weight_rho/eps: (output_dim, input_dim)."""
    out_dim, in_dim = weight_mu.shape
    orig_shape = x.shape
    x2d = x.reshape(-1, in_dim)
    m = x2d.shape[0]
    dtype = x.dtype
    # TODO(synk): optionally cast operands to bf16 (f32 accumulation) for the
    # bf16-native MXU on v6e/v7x -- kept in the input dtype here to preserve
    # the f32 PyTorch reference numerics.

    # Sublane multiple for the M (second-to-last) axis of x / output tiles.
    sub = {4: 8, 2: 16, 1: 32}[jnp.dtype(dtype).itemsize]

    # ---- matmul tile selection (lane-dense, 256-aligned N for v6e/v7x MXU) ----
    bm = min(block_m, _round_up(m, sub))
    bn = min(block_n, _round_up(out_dim, 128))
    if bn >= 256:
        bn -= bn % 256
    bk = min(block_k, _round_up(in_dim, 128))

    grid_m = pl.cdiv(m, bm)
    grid_n = pl.cdiv(out_dim, bn)
    grid_k = pl.cdiv(in_dim, bk)

    # v7x has 2 TensorCores per chip: make sure the ("parallel","parallel")
    # extent is >= 2 whenever the problem allows it, so both cores get work.
    if grid_m * grid_n == 1 and m >= 2 * sub:
        bm = _round_up(pl.cdiv(m, 2), sub)
        grid_m = pl.cdiv(m, bm)

    k_w = grid_k * bk   # padded K extent (contraction axis), multiple of 128
    n_w = grid_n * bn   # padded N extent of the sampled weight, multiple of 128

    # Pad only the activation's K axis with zeros (and only when needed); the
    # weight-side padding is produced inside the kernels via iota masking, so
    # there are no wrapper-side pad round trips for mu/rho/eps.
    if k_w != in_dim:
        x2d = jnp.pad(x2d, ((0, 0), (0, k_w - in_dim)))

    grid = (grid_m, grid_n, grid_k)
    dim_sem3 = ("parallel", "parallel", "arbitrary")

    if fuse_sampling is None:
        fuse_sampling = grid_m <= 2

    if fuse_sampling:
        out = pl.pallas_call(
            functools.partial(_fused_kernel, out_dim=out_dim, in_dim=in_dim),
            out_shape=jax.ShapeDtypeStruct((m, out_dim), dtype),
            grid_spec=pltpu.PrefetchScalarGridSpec(
                num_scalar_prefetch=0,
                grid=grid,
                in_specs=[
                    pl.BlockSpec((bm, bk), lambda i, j, k: (i, k)),   # x
                    pl.BlockSpec((bn, bk), lambda i, j, k: (j, k)),   # mu
                    pl.BlockSpec((bn, bk), lambda i, j, k: (j, k)),   # rho
                    pl.BlockSpec((bn, bk), lambda i, j, k: (j, k)),   # eps
                ],
                out_specs=pl.BlockSpec((bm, bn), lambda i, j, k: (i, j)),
                scratch_shapes=[pltpu.VMEM((bm, bn), jnp.float32)],
            ),
            compiler_params=pltpu.CompilerParams(
                dimension_semantics=dim_sem3,
                vmem_limit_bytes=_VMEM_LIMIT_BYTES,
            ),
        )(x2d, weight_mu, weight_rho, eps)
    else:
        # ---- stage 1: tiled, pipelined weight sampling in (N, K) layout ----
        bsn = min(256, n_w)
        bsk = min(512, k_w)
        wt = pl.pallas_call(
            functools.partial(_sample_weight_kernel, out_dim=out_dim, in_dim=in_dim),
            out_shape=jax.ShapeDtypeStruct((n_w, k_w), dtype),
            grid_spec=pltpu.PrefetchScalarGridSpec(
                num_scalar_prefetch=0,
                grid=(pl.cdiv(n_w, bsn), pl.cdiv(k_w, bsk)),
                in_specs=[pl.BlockSpec((bsn, bsk), lambda i, j: (i, j))] * 3,
                out_specs=pl.BlockSpec((bsn, bsk), lambda i, j: (i, j)),
            ),
            compiler_params=pltpu.CompilerParams(
                dimension_semantics=("parallel", "parallel"),
                vmem_limit_bytes=_VMEM_LIMIT_BYTES,
            ),
        )(weight_mu, weight_rho, eps)

        # ---- stage 2: tiled (M,K) x (N,K)^T matmul ----
        use_acc = jnp.dtype(dtype) != jnp.dtype(jnp.float32)
        kernel = _matmul_acc_kernel if use_acc else _matmul_f32_kernel
        scratch = [pltpu.VMEM((bm, bn), jnp.float32)] if use_acc else []
        out = pl.pallas_call(
            kernel,
            out_shape=jax.ShapeDtypeStruct((m, out_dim), dtype),
            grid_spec=pltpu.PrefetchScalarGridSpec(
                num_scalar_prefetch=0,
                grid=grid,
                in_specs=[
                    pl.BlockSpec((bm, bk), lambda i, j, k: (i, k)),   # x tile
                    pl.BlockSpec((bn, bk), lambda i, j, k: (j, k)),   # sampled W tile (N,K)
                ],
                out_specs=pl.BlockSpec((bm, bn), lambda i, j, k: (i, j)),
                scratch_shapes=scratch,
            ),
            compiler_params=pltpu.CompilerParams(
                dimension_semantics=dim_sem3,
                vmem_limit_bytes=_VMEM_LIMIT_BYTES,
            ),
        )(x2d, wt)

    return out.reshape(*orig_shape[:-1], out_dim)


# --------------------------------------------------------------------------
# Demo / correctness check
# --------------------------------------------------------------------------
if __name__ == "__main__":
    def make_case(key, batch, seq, input_dim, output_dim):
        kx, kmu, krho, keps = jax.random.split(key, 4)
        x = jax.random.normal(kx, (batch, seq, input_dim), dtype=jnp.float32)
        # Deterministic "parameter init" mirroring the PyTorch __init__ ranges.
        weight_mu = jax.random.uniform(
            kmu, (output_dim, input_dim), minval=-0.2, maxval=0.2, dtype=jnp.float32)
        weight_rho = jax.random.uniform(
            krho, (output_dim, input_dim), minval=-5.0, maxval=-4.0, dtype=jnp.float32)
        # weight_prior.sample(...) — stochastic draw made deterministic via PRNGKey.
        eps = 0.0 + 1.0 * jax.random.normal(
            keps, (output_dim, input_dim), dtype=jnp.float32)
        return x, weight_mu, weight_rho, eps

    def reference(x, mu, rho, eps):
        w = mu + jnp.log1p(jnp.exp(rho)) * eps
        return jnp.einsum("...i,oi->...o", x, w,
                          precision=jax.lax.Precision.HIGHEST)

    key = jax.random.PRNGKey(0)
    k1, k2 = jax.random.split(key)

    # Case 1: module-sized small shapes -> fused sampling+matmul path.
    x, mu, rho, eps = make_case(k1, 2, 8, 32, 64)
    y = bayesian_linear_forward(x, mu, rho, eps)
    jax.block_until_ready(y)
    y_ref = reference(x, mu, rho, eps)
    assert y.shape == (2, 8, 64)
    assert jnp.allclose(y, y_ref, atol=1e-4, rtol=1e-4), \
        float(jnp.max(jnp.abs(y - y_ref)))

    # Case 2: larger ragged shapes -> tiled sampler + separate matmul path,
    # exercising boundary masking on the M, N and sampler tiles.
    x, mu, rho, eps = make_case(k2, 3, 520, 384, 320)
    y = bayesian_linear_forward(x, mu, rho, eps)
    jax.block_until_ready(y)
    y_ref = reference(x, mu, rho, eps)
    assert y.shape == (3, 520, 320)
    assert jnp.allclose(y, y_ref, atol=1e-3, rtol=1e-3), \
        float(jnp.max(jnp.abs(y - y_ref)))

    print("KERNEL_OK")
</pallas_src>

<mosaic_0001>
module attributes {stable_mosaic.version = 11 : i64} {
  func.func @_fused_kernel(%arg0: i32, %arg1: i32, %arg2: i32, %arg3: memref<8x128xf32, #tpu.memory_space<vmem>>, %arg4: memref<128x128xf32, #tpu.memory_space<vmem>>, %arg5: memref<128x128xf32, #tpu.memory_space<vmem>>, %arg6: memref<128x128xf32, #tpu.memory_space<vmem>>, %arg7: memref<8x128xf32, #tpu.memory_space<vmem>>, %arg8: memref<8x128xf32, #tpu.memory_space<vmem>>) attributes {dimension_semantics = [#tpu.dimension_semantics<parallel>, #tpu.dimension_semantics<parallel>, #tpu.dimension_semantics<arbitrary>], iteration_bounds = array<i64: 2, 1, 1>, scalar_prefetch = 0 : i64, scratch_operands = 1 : i64, tpu.core_type = #tpu.core_type<tc>, window_params = [{transform_indices = @transform_0, window_bounds = array<i64: 8, 128>}, {transform_indices = @transform_1, window_bounds = array<i64: 128, 128>}, {transform_indices = @transform_2, window_bounds = array<i64: 128, 128>}, {transform_indices = @transform_3, window_bounds = array<i64: 128, 128>}, {transform_indices = @transform_4, window_bounds = array<i64: 8, 128>}]} {
    %c0_i32 = arith.constant 0 : i32
    %0 = arith.cmpi eq, %arg2, %c0_i32 : i32
    %1 = arith.extui %0 : i1 to i32
    %c0_i32_0 = arith.constant 0 : i32
    %2 = arith.cmpi ne, %1, %c0_i32_0 : i32
    scf.if %2 {
      %cst_18 = arith.constant 0.000000e+00 : f32
      %45 = vector.broadcast %cst_18 : f32 to vector<8x128xf32>
      %c0_19 = arith.constant 0 : index
      %c0_20 = arith.constant 0 : index
      %46 = vector.load %arg8[%c0_19, %c0_20] : memref<8x128xf32, #tpu.memory_space<vmem>>, vector<8x128xf32>
      tpu.vector_store %arg8[%c0_19, %c0_20], %45 {strides = array<i32>} : memref<8x128xf32, #tpu.memory_space<vmem>>, vector<8x128xf32>,
    } else {
    }
    %c128_i32 = arith.constant 128 : i32
    %3 = arith.muli %arg1, %c128_i32 : i32
    %4 = tpu.iota {dimensions = array<i32: 0>} : vector<128x128xi32>
    %5 = vector.broadcast %3 : i32 to vector<128x128xi32>
    %6 = arith.addi %5, %4 : vector<128x128xi32>
    %c128_i32_1 = arith.constant 128 : i32
    %7 = arith.muli %arg2, %c128_i32_1 : i32
    %8 = tpu.iota {dimensions = array<i32: 1>} : vector<128x128xi32>
    %9 = vector.broadcast %7 : i32 to vector<128x128xi32>
    %10 = arith.addi %9, %8 : vector<128x128xi32>
    %c64_i32 = arith.constant 64 : i32
    %11 = vector.broadcast %c64_i32 : i32 to vector<128x128xi32>
    %12 = arith.cmpi slt, %6, %11 : vector<128x128xi32>
    %c32_i32 = arith.constant 32 : i32
    %13 = vector.broadcast %c32_i32 : i32 to vector<128x128xi32>
    %14 = arith.cmpi slt, %10, %13 : vector<128x128xi32>
    %15 = arith.andi %12, %14 : vector<128x128xi1>
    %c0 = arith.constant 0 : index
    %c0_2 = arith.constant 0 : index
    %16 = vector.load %arg5[%c0, %c0_2] : memref<128x128xf32, #tpu.memory_space<vmem>>, vector<128x128xf32>
    %cst = arith.constant 0.000000e+00 : f32
    %17 = vector.broadcast %cst : f32 to vector<128x128xf32>
    %18 = arith.maximumf %16, %17 : vector<128x128xf32>
    %19 = vector.broadcast %cst : f32 to vector<128x128xf32>
    %20 = arith.subf %16, %19 : vector<128x128xf32>
    %21 = arith.cmpf one, %20, %20 : vector<128x128xf32>
    %22 = vector.broadcast %cst : f32 to vector<128x128xf32>
    %23 = arith.addf %16, %22 : vector<128x128xf32>
    %24 = math.absf %20 : vector<128x128xf32>
    %cst_3 = arith.constant 0.000000e+00 : f32
    %25 = vector.broadcast %cst_3 : f32 to vector<128x128xf32>
    %26 = arith.subf %25, %24 : vector<128x128xf32>
    %27 = math.exp %26 : vector<128x128xf32>
    %28 = math.log1p %27 : vector<128x128xf32>
    %29 = arith.addf %18, %28 : vector<128x128xf32>
    %30 = arith.select %21, %23, %29 : vector<128x128xi1>, vector<128x128xf32>
    %c0_4 = arith.constant 0 : index
    %c0_5 = arith.constant 0 : index
    %31 = vector.load %arg4[%c0_4, %c0_5] : memref<128x128xf32, #tpu.memory_space<vmem>>, vector<128x128xf32>
    %c0_6 = arith.constant 0 : index
    %c0_7 = arith.constant 0 : index
    %32 = vector.load %arg6[%c0_6, %c0_7] : memref<128x128xf32, #tpu.memory_space<vmem>>, vector<128x128xf32>
    %33 = arith.mulf %30, %32 : vector<128x128xf32>
    %34 = arith.addf %31, %33 : vector<128x128xf32>
    %cst_8 = arith.constant 0.000000e+00 : f32
    %35 = vector.broadcast %cst_8 : f32 to vector<128x128xf32>
    %36 = arith.select %15, %34, %35 : vector<128x128xi1>, vector<128x128xf32>
    %c0_9 = arith.constant 0 : index
    %c0_10 = arith.constant 0 : index
    %37 = vector.load %arg8[%c0_9, %c0_10] : memref<8x128xf32, #tpu.memory_space<vmem>>, vector<8x128xf32>
    %c0_11 = arith.constant 0 : index
    %c0_12 = arith.constant 0 : index
    %38 = vector.load %arg3[%c0_11, %c0_12] : memref<8x128xf32, #tpu.memory_space<vmem>>, vector<8x128xf32>
    %cst_13 = arith.constant dense<0.000000e+00> : vector<8x128xf32>
    %39 = tpu.matmul %38, %36, %cst_13 {dimension_numbers = #tpu.dot_dimension_numbers<[1], [1], [0], [0], [0, 0, 1, 0], [], []>} : vector<8x128xf32>, vector<128x128xf32>, vector<8x128xf32> -> vector<8x128xf32>
    %40 = arith.addf %37, %39 : vector<8x128xf32>
    %c0_14 = arith.constant 0 : index
    %c0_15 = arith.constant 0 : index
    %41 = vector.load %arg8[%c0_14, %c0_15] : memref<8x128xf32, #tpu.memory_space<vmem>>, vector<8x128xf32>
    tpu.vector_store %arg8[%c0_14, %c0_15], %40 {strides = array<i32>} : memref<8x128xf32, #tpu.memory_space<vmem>>, vector<8x128xf32>,
    %c0_i32_16 = arith.constant 0 : i32
    %42 = arith.cmpi eq, %arg2, %c0_i32_16 : i32
    %43 = arith.extui %42 : i1 to i32
    %c0_i32_17 = arith.constant 0 : i32
    %44 = arith.cmpi ne, %43, %c0_i32_17 : i32
    scf.if %44 {
      %c0_18 = arith.constant 0 : index
      %c0_19 = arith.constant 0 : index
      %45 = vector.load %arg8[%c0_18, %c0_19] : memref<8x128xf32, #tpu.memory_space<vmem>>, vector<8x128xf32>
      %c0_20 = arith.constant 0 : index
      %c0_21 = arith.constant 0 : index
      %46 = vector.load %arg7[%c0_20, %c0_21] : memref<8x128xf32, #tpu.memory_space<vmem>>, vector<8x128xf32>
      tpu.vector_store %arg7[%c0_20, %c0_21], %45 {strides = array<i32>} : memref<8x128xf32, #tpu.memory_space<vmem>>, vector<8x128xf32>,
    } else {
    }
    return
  }
  func.func @transform_0(%arg0: i32, %arg1: i32, %arg2: i32) -> (i32, i32) {
    %c0_i32 = arith.constant 0 : i32
    return %arg0, %arg2 : i32, i32
  }
  func.func @transform_1(%arg0: i32, %arg1: i32, %arg2: i32) -> (i32, i32) {
    %c0_i32 = arith.constant 0 : i32
    return %arg1, %arg2 : i32, i32
  }
  func.func @transform_2(%arg0: i32, %arg1: i32, %arg2: i32) -> (i32, i32) {
    %c0_i32 = arith.constant 0 : i32
    return %arg1, %arg2 : i32, i32
  }
  func.func @transform_3(%arg0: i32, %arg1: i32, %arg2: i32) -> (i32, i32) {
    %c0_i32 = arith.constant 0 : i32
    return %arg1, %arg2 : i32, i32
  }
  func.func @transform_4(%arg0: i32, %arg1: i32, %arg2: i32) -> (i32, i32) {
    %c0_i32 = arith.constant 0 : i32
    return %arg0, %arg1 : i32, i32
  }
}

</mosaic_0001>

<bundles_post_ra>
// kernel: bayesian_linear_forward.1
= control target key start
LH: loop header
LB: loop body
LE: loop exit
PB: predicated region body
PF: predicated region fallthrough
CT: control target
= control target key end

     0   :  { %9 = vsyncpa [#allocation4], 0  ;;  %s1634_s0 = inlined_call_operand.vmem [shape: f32[16,128], index: 0, kind: input, shape index: {}]   ;;  %s1635_s1 = inlined_call_operand.vmem [shape: f32[64,32], index: 1, kind: input, shape index: {}]   ;;  %s1636_s2 = inlined_call_operand.vmem [shape: f32[64,32], index: 2, kind: input, shape index: {}]   ;;  %s1637_s3 = inlined_call_operand.vmem [shape: f32[64,32], index: 3, kind: input, shape index: {}]   ;;  %s1638_s4 = inlined_call_operand.hbm [shape: f32[16,64], index: 4, kind: output, shape index: {}]  }
   0x1   :  { %11 = vsyncpa [#allocation4 + $0x1], 0  ;;  %s1283_s15 = smov 0   ;;  %s1285_s16 = smov 0  }
   0x2   :  { %s1287_s17 = smov 0   ;;  %s1289_s18 = smov 0  }
   0x3   :  { %s1291_s19 = smov 0   ;;  %s1293_s20 = smov 0  }
   0x4 LB: > { %s1038_s21 = sadd.s32 4294967295, %s1253_s20   ;;  %s1039_s22 = sadd.s32 4294967294, %s1253_s20   ;;  %s1253_s20 = sphi %s1293_s20, %s17_s20   ;;  %s1249_s19 = sphi %s1291_s19, %s1661_s19   ;;  %s1245_s18 = sphi %s1289_s18, %s1660_s18   ;;  %s1241_s17 = sphi %s1287_s17, %s1659_s17   ;;  %s1237_s16 = sphi %s1285_s16, %s1658_s16   ;;  %s1233_s15 = sphi %s1283_s15, %s1657_s15  }
   0x5   : > { %s36_s23 = sadd.s32 1, %s1249_s19  ;;  %s157_s24 = sadd.s32 1, %s1241_s17 }
   0x6   : > { %p38_p0 = scmp.ge.s32.totalorder %s36_s23, 2  ;;  %p167_p1 = scmp.ne.s32.totalorder %s1241_s17, %s1237_s16 }
   0x7   : > { %p168_p2 = scmp.eq.s32.totalorder %s1038_s21, 1  ;;  %p173_p3 = scmp.ne.s32.totalorder %s1237_s16, %s1233_s15 }
   0x8   : > { %s1663_s23 = smov (%p38_p0, %s36_s23), 0  ;;  %p174_p5 = scmp.eq.s32.totalorder %s1039_s22, 1 }
   0x9   : > { %p1323_p4 = por %p168_p2, %p167_p1  ;;  %s152_s26 = ssub.s32 %s1249_s19, %s1663_s23 }
   0xa   : > { %p1045_p6 = scmp.ge.s32.totalorder %s1253_s20, 1  ;;  %p155_p7 = scmp.eq.s32.totalorder %s152_s26, 0 }
   0xb   : > { %p1330_p8 = por %p174_p5, %p173_p3  ;;  %p250_p9 = scmp.lt.s32.totalorder %s1253_s20, 3 }
   0xc   : > { %s1336_s28 = scalar_select %p155_p7, %s1241_s17, %s157_s24  }
   0xd   : > { %p251_p10 = pnand %p1045_p6, %p250_p9 }
   0xe   : > { %p308_p11 = scmp.lt.s32.totalorder (!%p251_p10), %s1245_s18, 1  ;;  %s305_s8 = sand.u32 (!%p251_p10), 1, %s1237_s16  }
   0xf   : > { %254 = sbr.rel (%p251_p10) target bundleno = 305 (0x131), region = 36  ;;  %s1046_s9 = sshll.u32 (!%p251_p10), %s305_s8, 3 }
  0x10   : > { %s307_s10 = scalar_lea.vmem (!%p251_p10), [#allocation3], %s1046_s9  ;;  %s1057_s12 = sshll.u32 (!%p251_p10), %s1245_s18, 7 }
  0x11   : > { %s910_s11 = sshll.u32 (!%p251_p10), %s307_s10, 4  ;;  %s1590_s21 = scalar_lea.hbm (!%p251_p10), %s1638_s4, %s1057_s12  ;;  %s1585_s11 = int_to_ptr.vmem [resolvable:$true] %s910_s11 }
  0x12   : > { %s896_s22 = scalar_lea.sflag (!%p251_p10), [#allocation4], %s305_s8 }
  0x14   : > { %v1341_v0 = vld [vmem:[%s1636_s2 + $0x38] sm:$0xff]  ;;  %v1255_v1 = vmov 0.0   ;;  %v1348_v3 = vld [vmem:[%s1636_s2 + $0x30] sm:$0xff]  ;;  %vm1256_vm0 = vmmov 0   ;;  %v1355_v5 = vld [vmem:[%s1636_s2 + $0x28] sm:$0xff]  ;;  %v395_v42 = vlaneseq  ;;  %s309_s24 = scalar_select %p308_p11, %s1245_s18, 1 }
  0x15   : > { %1069 = vmatprep.subr.mxu0 %v1255_v1  ;;  %v503_v2 = vand.u32 2147483647, %v1341_v0  ;;  %1085 = vmatprep.mubr.msk.f32.mxu0 %vm1256_vm0, %v1255_v1  ;;  %v502_v4 = vand.u32 2147483647, %v1348_v3  ;;  %v501_v7 = vand.u32 2147483647, %v1355_v5  ;;  %vm471_vm1 = vcmp.ne.f32.partialorder %v1341_v0, %v1341_v0 }
  0x16   : > { %v1361_v8 = vld [vmem:[%s1636_s2 + $0x20] sm:$0xff]  ;;  %v1366_v10 = vld [vmem:[%s1636_s2 + $0x18] sm:$0xff]  ;;  %v1373_v18 = vld [vmem:[%s1636_s2 + $0x10] sm:$0xff]  ;;  %v1398_v51 = vand.u32 127, %v395_v42  ;;  %v455_v52 = vmax.f32 %v1341_v0, 0.0  ;;  %v454_v55 = vmax.f32 %v1348_v3, 0.0  ;;  %vm470_vm2 = vcmp.ne.f32.partialorder %v1348_v3, %v1348_v3 }
  0x17   : > { %v519_v6 = vsub.f32 0.0, %v503_v2  ;;  %v518_v9 = vsub.f32 0.0, %v502_v4  ;;  %v517_v12 = vsub.f32 0.0, %v501_v7  ;;  %v500_v13 = vand.u32 2147483647, %v1361_v8  ;;  %v1378_v20 = vld [vmem:[%s1636_s2 + $0x8] sm:$0xff] }
  0x18   : > { %v499_v15 = vand.u32 2147483647, %v1366_v10  ;;  %v498_v22 = vand.u32 2147483647, %v1373_v18  ;;  %v1384_v23 = vld [vmem:[%s1636_s2] sm:$0xff]  ;;  %v453_v63 = vmax.f32 %v1355_v5, 0.0  ;;  %vm469_vm3 = vcmp.ne.f32.partialorder %v1355_v5, %v1355_v5 }
  0x19   : > { %v542_v11 = vmul.f32 1.442695, %v519_v6  ;;  %v540_v14 = vmul.f32 1.442695, %v518_v9  ;;  %v538_v16 = vmul.f32 1.442695, %v517_v12  ;;  %vm468_vm7 = vcmp.ne.f32.partialorder %v1361_v8, %v1361_v8 }
  0x1a   : > { %v516_v17 = vsub.f32 0.0, %v500_v13  ;;  %v515_v19 = vsub.f32 0.0, %v499_v15  ;;  %v497_v25 = vand.u32 2147483647, %v1378_v20  ;;  %v514_v26 = vsub.f32 0.0, %v498_v22  ;;  %s1047_s30 = sshll.u32 %s309_s24, 3 }
  0x1b   : > { %1145 = vpow2.f32 %v542_v11  ;;  %v496_v27 = vand.u32 2147483647, %v1384_v23  ;;  %v452_v7 = vmax.f32 %v1361_v8, 0.0  ;;  %vm415_vm4 = vcmp.lt.s32.totalorder %v1398_v51, 32  ;;  %s314_s7 = scalar_lea.vmem %s1634_s0, %s1047_s30  ;;  %s1177_s24 = scalar_lea.vmem %s1585_s11, 128 }
  0x1c   : > { %1147 = vpow2.f32 %v540_v14  ;;  %v536_v21 = vmul.f32 1.442695, %v516_v17  ;;  %v534_v24 = vmul.f32 1.442695, %v515_v19  ;;  %v513_v28 = vsub.f32 0.0, %v497_v25  ;;  %p1178_p12 = scmp.ne.s32.totalorder %s1585_s11, %s1177_s24  ;;  %s1257_s18 = smov [#allocation3]  }
  0x1d   : > { %1149 = vpow2.f32 %v538_v16  ;;  %v532_v29 = vmul.f32 1.442695, %v514_v26  ;;  %v512_v30 = vsub.f32 0.0, %v496_v27  ;;  %v451_v27 = vmax.f32 %v1366_v10, 0.0  ;;  %s1181_s26 = sshll.u32 %s1257_s18, 4  ;;  %s1182_s26 = int_to_ptr.vmem [resolvable:$false] %s1181_s26 }
  0x1e   : > { %1151 = vpow2.f32 %v536_v21  ;;  %v530_v31 = vmul.f32 1.442695, %v513_v28  ;;  %vm467_vm12 = vcmp.ne.f32.partialorder %v1366_v10, %v1366_v10  ;;  %vm466_vm14 = vcmp.ne.f32.partialorder %v1373_v18, %v1373_v18  ;;  %p1179_p13 = pnand %p1178_p12, %p1323_p4  ;;  %s1183_s29 = scalar_lea.vmem %s1182_s26, 256 }
  0x1f   : > { %1153 = vpow2.f32 %v534_v24  ;;  %v528_v32 = vmul.f32 1.442695, %v512_v30  ;;  %vm465_vm0 = vcmp.ne.f32.partialorder %v1378_v20, %v1378_v20  ;;  %p1184_p1 = scmp.lt.s32.totalorder %s1585_s11, %s1182_s26  ;;  %p1185_p2 = scmp.lt.s32.totalorder %s1183_s29, %s1177_s24 }
  0x20   : > { %1155 = vpow2.f32 %v532_v29  ;;  %p1180_p0 = pneg %p1179_p13 }
  0x21   : > { %1157 = vpow2.f32 %v530_v31  ;;  %p1186_p3 = por %p1185_p2, %p1184_p1 }
  0x22   : > { %1159 = vpow2.f32 %v528_v32 }
  0x23   : > { %p1187_p5 = pnand %p1186_p3, %p1180_p0 }
  0x28   : > { %v1146_v33 = vpop.eup %1145 }
  0x29   : > { %v1148_v34 = vpop.eup %1147  ;;  %v623_v35 = vadd.f32 1.0, %v1146_v33  ;;  %v626_v43 = vmul.f32 -0.5, %v1146_v33  ;;  %v629_v57 = vand.u32 2147483647, %v1146_v33 }
  0x2a   : > { %v1150_v36 = vpop.eup %1149  ;;  %v614_v37 = vadd.f32 1.0, %v1148_v34  ;;  %v617_v46 = vmul.f32 -0.5, %v1148_v34  ;;  %v620_v59 = vand.u32 2147483647, %v1148_v34 }
  0x2b   : > { %1161 = vlog2.f32 %v623_v35  ;;  %v605_v38 = vadd.f32 1.0, %v1150_v36  ;;  %v1152_v39 = vpop.eup %1151  ;;  %v608_v48 = vmul.f32 -0.5, %v1150_v36  ;;  %v627_v54 = vadd.f32 1.0, %v626_v43  ;;  %v759_v35 = vld [vmem:[%s1637_s3 + $0x38] sm:$0xff] }
  0x2c   : > { %1163 = vlog2.f32 %v614_v37  ;;  %v1388_v40 = vpop.eup %1153  ;;  %v596_v41 = vadd.f32 1.0, %v1152_v39  ;;  %v599_v56 = vmul.f32 -0.5, %v1152_v39  ;;  %v618_v58 = vadd.f32 1.0, %v617_v46  ;;  %v739_v37 = vld [vmem:[%s1635_s1 + $0x18] sm:$0xff] }
  0x2d   : > { %1165 = vlog2.f32 %v605_v38  ;;  %v587_v44 = vadd.f32 1.0, %v1388_v40  ;;  %v1391_v45 = vpop.eup %1155  ;;  %v609_v60 = vadd.f32 1.0, %v608_v48  ;;  %v590_v61 = vmul.f32 -0.5, %v1388_v40 }
  0x2e   : > { %1167 = vlog2.f32 %v596_v41  ;;  %v1393_v47 = vpop.eup %1157  ;;  %v578_v49 = vadd.f32 1.0, %v1391_v45  ;;  %v611_v2 = vand.u32 2147483647, %v1150_v36  ;;  %v581_v4 = vmul.f32 -0.5, %v1391_v45  ;;  %v758_v41 = vld [vmem:[%s1637_s3 + $0x30] sm:$0xff] }
  0x2f   : > { %1169 = vlog2.f32 %v587_v44  ;;  %v1396_v50 = vpop.eup %1159  ;;  %v569_v53 = vadd.f32 1.0, %v1393_v47  ;;  %v628_v6 = vmul.f32 %v1146_v33, %v627_v54  ;;  %v600_v9 = vadd.f32 1.0, %v599_v56 }
  0x30   : > { %1171 = vlog2.f32 %v578_v49  ;;  %v560_v62 = vadd.f32 1.0, %v1396_v50  ;;  %v602_v11 = vand.u32 2147483647, %v1152_v39  ;;  %vm1415_vm5 = vcmp.lt.f32.partialorder %v629_v57, 0.0004427343  ;;  %v743_v49 = vld [vmem:[%s1635_s1 + $0x38] sm:$0xff] }
  0x31   : > { %1173 = vlog2.f32 %v569_v53  ;;  %v619_v14 = vmul.f32 %v1148_v34, %v618_v58  ;;  %vm1419_vm6 = vcmp.lt.f32.partialorder %v620_v59, 0.0004427343  ;;  %v593_v16 = vand.u32 2147483647, %v1388_v40  ;;  %v742_v58 = vld [vmem:[%s1635_s1 + $0x30] sm:$0xff] }
  0x32   : > { %v610_v21 = vmul.f32 %v1150_v36, %v609_v60  ;;  %v591_v22 = vadd.f32 1.0, %v590_v61  ;;  %1175 = vlog2.f32 %v560_v62  ;;  %vm1426_vm8 = vcmp.lt.f32.partialorder %v611_v2, 0.0004427343  ;;  %v757_v60 = vld [vmem:[%s1637_s3 + $0x28] sm:$0xff] }
  0x33   : > { %v582_v28 = vadd.f32 1.0, %v581_v4  ;;  %v601_v31 = vmul.f32 %v1152_v39, %v600_v9  ;;  %vm1433_vm9 = vcmp.lt.f32.partialorder %v602_v11, 0.0004427343  ;;  %vm1442_vm10 = vcmp.lt.f32.partialorder %v593_v16, 0.0004427343 }
  0x34   : > { %v572_v38 = vmul.f32 -0.5, %v1393_v47  ;;  %v592_v44 = vmul.f32 %v1388_v40, %v591_v22  ;;  %v584_v54 = vand.u32 2147483647, %v1391_v45  ;;  %v563_v4 = vmul.f32 -0.5, %v1396_v50 }
  0x35   : > { %v583_v53 = vmul.f32 %v1391_v45, %v582_v28  ;;  %v450_v16 = vmax.f32 %v1373_v18, 0.0  ;;  %v740_v28 = vld [vmem:[%s1635_s1 + $0x20] sm:$0xff] }
  0x36   : > { %v573_v61 = vadd.f32 1.0, %v572_v38  ;;  %vm1481_vm11 = vcmp.lt.f32.partialorder %v584_v54, 0.0004427343  ;;  %v564_v22 = vadd.f32 1.0, %v563_v4 }
  0x38   : > { %v1162_v12 = vpop.eup %1161 }
  0x39   : > { %v1164_v17 = vpop.eup %1163  ;;  %v625_v19 = vmul.f32 0.6931472, %v1162_v12  ;;  %v741_v12 = vld [vmem:[%s1635_s1 + $0x28] sm:$0xff] }
  0x3a   : > { %v1166_v24 = vpop.eup %1165  ;;  %v616_v25 = vmul.f32 0.6931472, %v1164_v17 }
  0x3b   : > { %v631_v29 = vsel %vm1415_vm5, %v628_v6, %v625_v19  ;;  %v607_v30 = vmul.f32 0.6931472, %v1166_v24  ;;  %v1168_v33 = vpop.eup %1167 }
  0x3c   : > { %v711_v34 = vadd.f32 %v631_v29, %v455_v52  ;;  %v622_v36 = vsel %vm1419_vm6, %v619_v14, %v616_v25  ;;  %v598_v43 = vmul.f32 0.6931472, %v1168_v33  ;;  %v1170_v46 = vpop.eup %1169  ;;  %v756_v14 = vld [vmem:[%s1637_s3 + $0x20] sm:$0xff]  ;;  %v566_v25 = vand.u32 2147483647, %v1396_v50  ;;  %v755_v29 = vld [vmem:[%s1637_s3 + $0x18] sm:$0xff] }
  0x3d   : > { %v710_v39 = vadd.f32 %v622_v36, %v454_v55  ;;  %v613_v42 = vsel %vm1426_vm8, %v610_v21, %v607_v30  ;;  %v589_v57 = vmul.f32 0.6931472, %v1170_v46  ;;  %v574_v21 = vmul.f32 %v1393_v47, %v573_v61 }
  0x3e   : > { %v727_v48 = vsel %vm471_vm1, %v1341_v0, %v711_v34  ;;  %v709_v52 = vadd.f32 %v613_v42, %v453_v63  ;;  %v604_v56 = vsel %vm1433_vm9, %v601_v31, %v598_v43  ;;  %v1172_v0 = vpop.eup %1171  ;;  %v449_v31 = vmax.f32 %v1378_v20, 0.0 }
  0x3f   : > { %v775_v55 = vmul.f32 %v759_v35, %v727_v48  ;;  %v726_v40 = vsel %vm470_vm2, %v1348_v3, %v710_v39  ;;  %v708_v3 = vadd.f32 %v604_v56, %v452_v7  ;;  %v595_v63 = vsel %vm1442_vm10, %v592_v44, %v589_v57  ;;  %v1174_v6 = vpop.eup %1173  ;;  %v753_v48 = vld [vmem:[%s1637_s3 + $0x8] sm:$0xff]  ;;  %v736_v57 = vld [vmem:[%s1635_s1] sm:$0xff] }
  0x40   : > { %v774_v59 = vmul.f32 %v758_v41, %v726_v40  ;;  %v725_v45 = vsel %vm469_vm3, %v1355_v5, %v709_v52  ;;  %v580_v2 = vmul.f32 0.6931472, %v1172_v0  ;;  %v575_v5 = vand.u32 2147483647, %v1393_v47  ;;  %v1176_v24 = vpop.eup %1175  ;;  %v817_v0 = vld [vmem:[%s314_s7] sm:$0xff] }
  0x41   : > { %v791_v62 = vadd.f32 %v775_v55, %v743_v49  ;;  %v773_v7 = vmul.f32 %v757_v60, %v725_v45  ;;  %v724_v13 = vsel %vm468_vm7, %v1361_v8, %v708_v3  ;;  %v707_v15 = vadd.f32 %v595_v63, %v451_v27  ;;  %v752_v55 = vld [vmem:[%s1637_s3] sm:$0xff] }
  0x42   : > { %v790_v11 = vadd.f32 %v774_v59, %v742_v58  ;;  %v586_v17 = vsel %vm1481_vm11, %v583_v53, %v580_v2  ;;  %v571_v19 = vmul.f32 0.6931472, %v1174_v6  ;;  %vm1505_vm13 = vcmp.lt.f32.partialorder %v575_v5, 0.0004427343 }
  0x43   : > { %1070 = vmatpush3.xpose.msk.msra.mxu0 %vm415_vm4, %v791_v62  ;;  %v789_v26 = vadd.f32 %v773_v7, %v741_v12  ;;  %v772_v27 = vmul.f32 %v756_v14, %v724_v13  ;;  %v723_v47 = vsel %vm467_vm12, %v1366_v10, %v707_v15  ;;  %v706_v30 = vadd.f32 %v586_v17, %v450_v16 }
  0x44   : > { %1071 = vmatprep.subr.mxu0 %v1255_v1  ;;  %v577_v32 = vsel %vm1505_vm13, %v574_v21, %v571_v19  ;;  %v562_v33 = vmul.f32 0.6931472, %v1176_v24  ;;  %v565_v34 = vmul.f32 %v1396_v50, %v564_v22  ;;  %vm1526_vm15 = vcmp.lt.f32.partialorder %v566_v25, 0.0004427343  ;;  %v754_v50 = vld [vmem:[%s1637_s3 + $0x10] sm:$0xff] }
  0x45   : > { %v788_v10 = vadd.f32 %v772_v27, %v740_v28  ;;  %v771_v36 = vmul.f32 %v755_v29, %v723_v47  ;;  %v722_v38 = vsel %vm466_vm14, %v1373_v18, %v706_v30  ;;  %v705_v39 = vadd.f32 %v577_v32, %v449_v31  ;;  %v738_v18 = vld [vmem:[%s1635_s1 + $0x10] sm:$0xff] }
  0x46   : > { %v448_v41 = vmax.f32 %v1384_v23, 0.0  ;;  %v568_v42 = vsel %vm1526_vm15, %v565_v34, %v562_v33  ;;  %v770_v44 = vmul.f32 %v754_v50, %v722_v38  ;;  %vm464_vm1 = vcmp.ne.f32.partialorder %v1384_v23, %v1384_v23 }
  0x47   : > { %1072 = vmatpush3.xpose.msk.msra.mxu0 %vm415_vm4, %v790_v11  ;;  %v787_v43 = vadd.f32 %v771_v36, %v739_v37  ;;  %v721_v46 = vsel %vm465_vm0, %v1378_v20, %v705_v39  ;;  %v737_v20 = vld [vmem:[%s1635_s1 + $0x8] sm:$0xff] }
  0x48   : > { %1073 = vmatprep.subr.mxu0 %v1255_v1  ;;  %v704_v49 = vadd.f32 %v568_v42, %v448_v41  ;;  %v786_v52 = vadd.f32 %v770_v44, %v738_v18  ;;  %v769_v53 = vmul.f32 %v753_v48, %v721_v46 }
  0x4a   : > { %v720_v54 = vsel %vm464_vm1, %v1384_v23, %v704_v49  ;;  %v785_v40 = vadd.f32 %v769_v53, %v737_v20 }
  0x4b   : > { %1074 = vmatpush3.xpose.msk.msra.mxu0 %vm415_vm4, %v789_v26  ;;  %v768_v56 = vmul.f32 %v752_v55, %v720_v54 }
  0x4c   : > { %1075 = vmatprep.subr.mxu0 %v1255_v1 }
  0x4d   : > { %v784_v23 = vadd.f32 %v768_v56, %v736_v57 }
  0x4f   : > { %1076 = vmatpush3.xpose.msk.msra.mxu0 %vm415_vm4, %v788_v10 }
  0x50   : > { %1077 = vmatprep.subr.mxu0 %v1255_v1 }
  0x53   : > { %1078 = vmatpush3.xpose.msk.msra.mxu0 %vm415_vm4, %v787_v43 }
  0x54   : > { %1079 = vmatprep.subr.mxu0 %v1255_v1 }
  0x57   : > { %1080 = vmatpush3.xpose.msk.msra.mxu0 %vm415_vm4, %v786_v52 }
  0x58   : > { %1081 = vmatprep.subr.mxu0 %v1255_v1 }
  0x5b   : > { %1082 = vmatpush3.xpose.msk.msra.mxu0 %vm415_vm4, %v785_v40 }
  0x5c   : > { %1083 = vmatprep.subr.mxu0 %v1255_v1 }
  0x5f   : > { %1084 = vmatpush3.xpose.msk.msra.mxu0 %vm415_vm4, %v784_v23 }
  0x62   : > { %1086 = vmatmul.mubr.f32.vlgmr.msra.gmra.mxu0 %v817_v0 }
 0x122   : > { %v884_v1 = vpop.f32.mrf.mxu0 }
 0x123   : > { %894 = vst [vmem:[%s307_s10] sm:$0xff] %v884_v1 }
 0x124   : > { %v1087_v51 = vpop.f32.mrf.mxu0 }
 0x125   : > { %1190 = shalt.err (!%p1187_p5)
}
 0x126   : > { %s1191_s30 = scalar_lea.hbm %s1590_s21, 128  ;;  %s1195_s7 = scalar_lea.hbm %s1638_s4, 256 }
 0x127   : > { %p1192_p6 = scmp.ne.s32.totalorder %s1590_s21, %s1191_s30  ;;  %p1196_p10 = scmp.lt.s32.totalorder %s1590_s21, %s1638_s4 }
 0x128   : > { %p1197_p11 = scmp.lt.s32.totalorder %s1195_s7, %s1191_s30 }
 0x129   : > { %p1193_p7 = pnand %p1192_p6, %p1323_p4 }
 0x12a   : > { %p1198_p12 = por %p1197_p11, %p1196_p10 }
 0x12b   : > { %p1194_p9 = pneg %p1193_p7 }
 0x12d   : > { %p1199_p13 = pnand %p1198_p12, %p1194_p9 }
 0x12f   : > { %1202 = shalt.err (!%p1199_p13)
}
 0x130   : > { %1088 = dma.vmem_to_hbm [thread:$0]  (%p1323_p4), %s1585_s11, 128, %s1590_s21, %s896_s22  }
 0x131 PF: > { %p1094_p0 = scmp.ge.s32.totalorder %s1253_s20, 2  ;;  %s922_s10 = sand.u32 1, %s1233_s15  }
 0x132   : > { %s923_s12 = scalar_lea.sflag [#allocation4], %s922_s10 }
 0x133   : > { %p1091_p1 = pnand %p1094_p0, %p1330_p8 }
 0x135   : > { %p1092_p2 = pneg %p1091_p1 }
 0x137   : > { %1228 = dma.done.wait (%p1092_p2), %s923_s12, 128  }
 0x138   : > { %1230 = vsyncadd (%p1092_p2), %s923_s12, 4294967168  ;;  %s17_s20 = sadd.s32 1, %s1253_s20   ;;  %s1657_s15 = smov %s1237_s16 }
 0x139   : > { %p14_p3 = scmp.ge.s32.totalorder %s17_s20, 4   ;;  %s1658_s16 = smov %s1241_s17 }
 0x13a   : > { %s1659_s17 = smov %s1336_s28  ;;  %s1660_s18 = smov %s1249_s19 }
 0x13b   : > { %s1661_s19 = smov %s1663_s23  ;;  %16 = sbr.rel (!%p14_p3) target bundleno = 4 (0x4), region = 88 }
 0x140   :  { %928 = vsyncpa [#allocation4], 1 }
 0x141   :  { %930 = vsyncpa [#allocation4 + $0x1], 1 }

</bundles_post_ra>
